<compile_context>
chip_gen: v7x
topology: tpu7x:2x2x1
jax: 0.10.0
libtpu: 0.0.40
codegen_flags: <defaults>
</compile_context>

<pallas_src>
import functools
import math

import jax
import jax.numpy as jnp
from jax import lax
from jax.experimental import pallas as pl
from jax.experimental.pallas import tpu as pltpu

_EPS = 1e-5


def _round_up(a, b):
    return (a + b - 1) // b * b


# ---------------------------------------------------------------------------
# Fused 2-phase kernel: phase 0 = streaming stats, phase 1 = finalize + apply.
# ---------------------------------------------------------------------------
def _fused_bn_kernel(x_ref, gamma_ref, beta_ref, o_ref,
                     sum_acc, sq_acc, scale_sc, shift_sc,
                     *, d, lane_w, tile_m, m_f, inv_m, eps, needs_mask):
    phase = pl.program_id(0)   # 0 = stats pass, 1 = apply pass
    i = pl.program_id(1)       # row-tile index

    # ---------------- Phase 0: accumulate per-lane sum / sum(x^2) ----------
    @pl.when(phase == 0)
    def _stats():
        @pl.when(i == 0)
        def _init():
            sum_acc[...] = jnp.zeros_like(sum_acc)
            sq_acc[...] = jnp.zeros_like(sq_acc)

        x = x_ref[...].astype(jnp.float32)
        if needs_mask:
            # Ragged last tile: rows past the true row count hold stale VMEM
            # data (edge blocks are clipped, not zero-filled) -> mask them.
            valid = m_f - i * tile_m
            rows = lax.broadcasted_iota(jnp.int32, (tile_m, lane_w), 0)
            x = jnp.where(rows < valid, x, 0.0)
        sum_acc[...] += jnp.sum(x, axis=0, keepdims=True)
        sq_acc[...] += jnp.sum(x * x, axis=0, keepdims=True)

    # ---------------- Phase 1: finalize once, then fused scale/shift -------
    @pl.when(phase == 1)
    def _apply():
        @pl.when(i == 0)
        def _finalize():
            s = sum_acc[...]
            q = sq_acc[...]
            # Combine the `fold` lane groups (groups of D lanes). Summing all
            # cyclic lane-shifts by multiples of D leaves EVERY lane j holding
            # the total for channel j % D, i.e. the per-channel sums already
            # replicated in the (1, lane_w) layout needed by the apply.
            # fold is a power of two -> log2(fold) doubling shifts (XLU).
            shift_lanes = d
            while shift_lanes < lane_w:
                s = s + pltpu.roll(s, shift=shift_lanes, axis=1)
                q = q + pltpu.roll(q, shift=shift_lanes, axis=1)
                shift_lanes *= 2
            mean = s * inv_m                                   # E[x]
            var = jnp.maximum(q * inv_m - mean * mean, 0.0)    # clamp >= 0
            inv_std = lax.rsqrt(var + eps)
            scale = gamma_ref[...] * inv_std
            scale_sc[...] = scale
            shift_sc[...] = beta_ref[...] - mean * scale

        x = x_ref[...].astype(jnp.float32)
        o_ref[...] = (x * scale_sc[...] + shift_sc[...]).astype(o_ref.dtype)


def batch_norm_pallas(x2d, gamma, beta, *, eps=_EPS,
                      target_tile_bytes=2 << 20, max_tile_rows=4096):
    """Training-mode BatchNorm1d over rows of x2d (shape (M, D)), affine."""
    M, D = x2d.shape
    dtype = x2d.dtype

    # --- Lane folding: largest power-of-two fold with M % fold == 0 so the
    #     (M, D) -> (M/fold, fold*D) view is a free reshape (no pad/copy) and
    #     lane_w = fold*D is 128-dense whenever the full fold applies.
    fold = 128 // math.gcd(D, 128)          # == lcm(D,128)//D, power of two
    while fold > 1 and M % fold != 0:
        fold //= 2
    lane_w = D * fold
    m_f = M // fold
    x_f = x2d.reshape(m_f, lane_w)          # metadata-only reshape

    # --- Row tile: ~2 MiB per buffer (capped at 4096 rows), multiple of 8.
    bytes_per_row = lane_w * jnp.dtype(dtype).itemsize
    tile_cap = max(8, (int(target_tile_bytes) // bytes_per_row) // 8 * 8)
    tile_m = min(tile_cap, int(max_tile_rows), _round_up(m_f, 8))
    tile_m = max(8, tile_m // 8 * 8)
    num_tiles = -(-m_f // tile_m)
    needs_mask = (m_f % tile_m) != 0

    # Affine params tiled to the folded lane layout (lane j <-> channel j % D).
    gamma_f = jnp.tile(gamma.astype(jnp.float32), fold).reshape(1, lane_w)
    beta_f = jnp.tile(beta.astype(jnp.float32), fold).reshape(1, lane_w)

    kernel = functools.partial(
        _fused_bn_kernel, d=D, lane_w=lane_w, tile_m=tile_m, m_f=m_f,
        inv_m=1.0 / float(M), eps=float(eps), needs_mask=needs_mask)

    y_f = pl.pallas_call(
        kernel,
        out_shape=jax.ShapeDtypeStruct((m_f, lane_w), dtype),
        grid_spec=pltpu.PrefetchScalarGridSpec(
            num_scalar_prefetch=0,
            grid=(2, num_tiles),            # (phase, row tile)
            in_specs=[
                # x: same row tile in both phases (no refetch when unchanged).
                pl.BlockSpec((tile_m, lane_w), lambda p, i: (i, 0)),
                pl.BlockSpec((1, lane_w), lambda p, i: (0, 0)),   # gamma
                pl.BlockSpec((1, lane_w), lambda p, i: (0, 0)),   # beta
            ],
            # Output block is pinned at 0 during phase 0 (no garbage
            # writebacks) and marches through the tiles during phase 1.
            out_specs=pl.BlockSpec((tile_m, lane_w), lambda p, i: (i * p, 0)),
            scratch_shapes=[pltpu.VMEM((1, lane_w), jnp.float32),   # sum
                            pltpu.VMEM((1, lane_w), jnp.float32),   # sum(x^2)
                            pltpu.VMEM((1, lane_w), jnp.float32),   # scale
                            pltpu.VMEM((1, lane_w), jnp.float32)]), # shift
        compiler_params=pltpu.CompilerParams(
            dimension_semantics=("arbitrary", "arbitrary"),
            vmem_limit_bytes=32 * 1024 * 1024),
    )(x_f, gamma_f, beta_f)

    return y_f.reshape(M, D)                # free reshape, no slice


class NormalizationPallas:
    """JAX/Pallas equivalent of the PyTorch `Normalization` module ('batch')."""

    def __init__(self, embed_dim, key):
        # Mirrors init_parameters(): uniform(-stdv, stdv), stdv = 1/sqrt(D).
        stdv = 1.0 / math.sqrt(embed_dim)
        k_w, k_b = jax.random.split(key)
        self.weight = jax.random.uniform(
            k_w, (embed_dim,), jnp.float32, minval=-stdv, maxval=stdv)
        self.bias = jax.random.uniform(
            k_b, (embed_dim,), jnp.float32, minval=-stdv, maxval=stdv)

    def __call__(self, inputs):
        x, h, mask = inputs
        mask = mask.astype(jnp.bool_)
        B, N, D = x.shape
        y2d = batch_norm_pallas(x.reshape(B * N, D), self.weight, self.bias)
        return (y2d.reshape(B, N, D), h, mask)


def _reference_batchnorm(x, gamma, beta):
    B, N, D = x.shape
    x2d = x.reshape(B * N, D).astype(jnp.float32)
    mean = jnp.mean(x2d, axis=0, keepdims=True)
    var = jnp.mean((x2d - mean) ** 2, axis=0, keepdims=True)
    y = (x2d - mean) / jnp.sqrt(var + _EPS) * gamma.reshape(1, D) + beta.reshape(1, D)
    return y.reshape(B, N, D)


if __name__ == "__main__":
    key = jax.random.PRNGKey(0)
    k_x, k_h, k_m, k_p, k_x2, k_x3, k_p3 = jax.random.split(key, 7)

    # --- Test 1: small module shape (fold=4, single tile, single x read) ---
    B, N, D = 2, 8, 32
    x = jax.random.normal(k_x, (B, N, D), dtype=jnp.float32)
    h = jax.random.normal(k_h, (B, N, D), dtype=jnp.float32)
    mask = (jax.random.uniform(k_m, (B, N)) > 0.5).astype(jnp.int32)

    module = NormalizationPallas(D, k_p)
    out_x, out_h, out_mask = module((x, h, mask))
    out_x = jax.block_until_ready(out_x)

    ref = _reference_batchnorm(x, module.weight, module.bias)
    assert jnp.max(jnp.abs(out_x - ref)) < 1e-4, "mismatch vs reference (test 1)"
    assert out_mask.dtype == jnp.bool_
    assert out_h.shape == h.shape

    # --- Test 2: ragged row count, forced multi-tile grid (masked last tile)
    B2, N2 = 2, 100                                   # M = 200 rows
    x2 = jax.random.normal(k_x2, (B2, N2, D), dtype=jnp.float32)
    y2 = batch_norm_pallas(x2.reshape(B2 * N2, D), module.weight, module.bias,
                           max_tile_rows=16)          # grid of 4 row tiles
    y2 = jax.block_until_ready(y2).reshape(B2, N2, D)
    ref2 = _reference_batchnorm(x2, module.weight, module.bias)
    assert jnp.max(jnp.abs(y2 - ref2)) < 1e-4, "mismatch vs reference (test 2)"

    # --- Test 3: D not 128-friendly and M not fold-divisible -> fold=1 path -
    B3, N3, D3 = 3, 7, 200
    x3 = jax.random.normal(k_x3, (B3, N3, D3), dtype=jnp.float32)
    mod3 = NormalizationPallas(D3, k_p3)
    mask3 = jax.random.uniform(k_m, (B3, N3)) > 0.5
    y3, _, _ = mod3((x3, x3, mask3))
    y3 = jax.block_until_ready(y3)
    ref3 = _reference_batchnorm(x3, mod3.weight, mod3.bias)
    assert jnp.max(jnp.abs(y3 - ref3)) < 1e-4, "mismatch vs reference (test 3)"

    print("KERNEL_OK")
</pallas_src>

<mosaic_0001>
module attributes {stable_mosaic.version = 11 : i64} {
  func.func @_fused_bn_kernel(%arg0: i32, %arg1: i32, %arg2: memref<8x128xf32, #tpu.memory_space<vmem>>, %arg3: memref<1x128xf32, #tpu.memory_space<vmem>>, %arg4: memref<1x128xf32, #tpu.memory_space<vmem>>, %arg5: memref<8x128xf32, #tpu.memory_space<vmem>>, %arg6: memref<1x128xf32, #tpu.memory_space<vmem>>, %arg7: memref<1x128xf32, #tpu.memory_space<vmem>>, %arg8: memref<1x128xf32, #tpu.memory_space<vmem>>, %arg9: memref<1x128xf32, #tpu.memory_space<vmem>>) attributes {dimension_semantics = [#tpu.dimension_semantics<arbitrary>, #tpu.dimension_semantics<arbitrary>], iteration_bounds = array<i64: 2, 1>, scalar_prefetch = 0 : i64, scratch_operands = 4 : i64, tpu.core_type = #tpu.core_type<tc>, window_params = [{transform_indices = @transform_0, window_bounds = array<i64: 8, 128>}, {pipeline_mode = #tpu.pipeline_mode<synchronous>, transform_indices = @transform_1, window_bounds = array<i64: 1, 128>}, {pipeline_mode = #tpu.pipeline_mode<synchronous>, transform_indices = @transform_2, window_bounds = array<i64: 1, 128>}, {transform_indices = @transform_3, window_bounds = array<i64: 8, 128>}]} {
    %c0_i32 = arith.constant 0 : i32
    %0 = arith.cmpi eq, %arg0, %c0_i32 : i32
    %1 = arith.extui %0 : i1 to i32
    %c0_i32_0 = arith.constant 0 : i32
    %2 = arith.cmpi ne, %1, %c0_i32_0 : i32
    scf.if %2 {
      %c0_i32_2 = arith.constant 0 : i32
      %6 = arith.cmpi eq, %arg1, %c0_i32_2 : i32
      %7 = arith.extui %6 : i1 to i32
      %c0_i32_3 = arith.constant 0 : i32
      %8 = arith.cmpi ne, %7, %c0_i32_3 : i32
      scf.if %8 {
        %cst_15 = arith.constant 0.000000e+00 : f32
        %28 = vector.broadcast %cst_15 : f32 to vector<1x128xf32>
        %c0_16 = arith.constant 0 : index
        %c0_17 = arith.constant 0 : index
        %29 = vector.load %arg6[%c0_16, %c0_17] : memref<1x128xf32, #tpu.memory_space<vmem>>, vector<1x128xf32>
        tpu.vector_store %arg6[%c0_16, %c0_17], %28 {strides = array<i32>} : memref<1x128xf32, #tpu.memory_space<vmem>>, vector<1x128xf32>,
        %cst_18 = arith.constant 0.000000e+00 : f32
        %30 = vector.broadcast %cst_18 : f32 to vector<1x128xf32>
        %c0_19 = arith.constant 0 : index
        %c0_20 = arith.constant 0 : index
        %31 = vector.load %arg7[%c0_19, %c0_20] : memref<1x128xf32, #tpu.memory_space<vmem>>, vector<1x128xf32>
        tpu.vector_store %arg7[%c0_19, %c0_20], %30 {strides = array<i32>} : memref<1x128xf32, #tpu.memory_space<vmem>>, vector<1x128xf32>,
      } else {
      }
      %c0 = arith.constant 0 : index
      %c0_4 = arith.constant 0 : index
      %9 = vector.load %arg2[%c0, %c0_4] : memref<8x128xf32, #tpu.memory_space<vmem>>, vector<8x128xf32>
      %c8_i32 = arith.constant 8 : i32
      %10 = arith.muli %arg1, %c8_i32 : i32
      %c4_i32 = arith.constant 4 : i32
      %11 = arith.subi %c4_i32, %10 : i32
      %12 = tpu.iota {dimensions = array<i32: 0>} : vector<8x128xi32>
      %13 = vector.broadcast %11 : i32 to vector<8x128xi32>
      %14 = arith.cmpi slt, %12, %13 : vector<8x128xi32>
      %cst = arith.constant 0.000000e+00 : f32
      %15 = vector.broadcast %cst : f32 to vector<8x128xf32>
      %16 = arith.select %14, %9, %15 : vector<8x128xi1>, vector<8x128xf32>
      %c0_5 = arith.constant 0 : index
      %c0_6 = arith.constant 0 : index
      %17 = vector.load %arg6[%c0_5, %c0_6] : memref<1x128xf32, #tpu.memory_space<vmem>>, vector<1x128xf32>
      %cst_7 = arith.constant dense<0.000000e+00> : vector<128xf32>
      %18 = vector.multi_reduction <add>, %16, %cst_7 [0] : vector<8x128xf32> to vector<128xf32>
      %19 = vector.shape_cast %18 : vector<128xf32> to vector<1x128xf32>
      %20 = arith.addf %17, %19 : vector<1x128xf32>
      %c0_8 = arith.constant 0 : index
      %c0_9 = arith.constant 0 : index
      %21 = vector.load %arg6[%c0_8, %c0_9] : memref<1x128xf32, #tpu.memory_space<vmem>>, vector<1x128xf32>
      tpu.vector_store %arg6[%c0_8, %c0_9], %20 {strides = array<i32>} : memref<1x128xf32, #tpu.memory_space<vmem>>, vector<1x128xf32>,
      %c0_10 = arith.constant 0 : index
      %c0_11 = arith.constant 0 : index
      %22 = vector.load %arg7[%c0_10, %c0_11] : memref<1x128xf32, #tpu.memory_space<vmem>>, vector<1x128xf32>
      %23 = arith.mulf %16, %16 : vector<8x128xf32>
      %cst_12 = arith.constant dense<0.000000e+00> : vector<128xf32>
      %24 = vector.multi_reduction <add>, %23, %cst_12 [0] : vector<8x128xf32> to vector<128xf32>
      %25 = vector.shape_cast %24 : vector<128xf32> to vector<1x128xf32>
      %26 = arith.addf %22, %25 : vector<1x128xf32>
      %c0_13 = arith.constant 0 : index
      %c0_14 = arith.constant 0 : index
      %27 = vector.load %arg7[%c0_13, %c0_14] : memref<1x128xf32, #tpu.memory_space<vmem>>, vector<1x128xf32>
      tpu.vector_store %arg7[%c0_13, %c0_14], %26 {strides = array<i32>} : memref<1x128xf32, #tpu.memory_space<vmem>>, vector<1x128xf32>,
    } else {
    }
    %c1_i32 = arith.constant 1 : i32
    %3 = arith.cmpi eq, %arg0, %c1_i32 : i32
    %4 = arith.extui %3 : i1 to i32
    %c0_i32_1 = arith.constant 0 : i32
    %5 = arith.cmpi ne, %4, %c0_i32_1 : i32
    scf.if %5 {
      %c0_i32_2 = arith.constant 0 : i32
      %6 = arith.cmpi eq, %arg1, %c0_i32_2 : i32
      %7 = arith.extui %6 : i1 to i32
      %c0_i32_3 = arith.constant 0 : i32
      %8 = arith.cmpi ne, %7, %c0_i32_3 : i32
      scf.if %8 {
        %c0_11 = arith.constant 0 : index
        %c0_12 = arith.constant 0 : index
        %17 = vector.load %arg6[%c0_11, %c0_12] : memref<1x128xf32, #tpu.memory_space<vmem>>, vector<1x128xf32>
        %c0_13 = arith.constant 0 : index
        %c0_14 = arith.constant 0 : index
        %18 = vector.load %arg7[%c0_13, %c0_14] : memref<1x128xf32, #tpu.memory_space<vmem>>, vector<1x128xf32>
        %c32_i32 = arith.constant 32 : i32
        %19 = tpu.dynamic_rotate %17 by %c32_i32 dim 1 : vector<1x128xf32>, i32 -> vector<1x128xf32>
        %20 = arith.addf %17, %19 : vector<1x128xf32>
        %c32_i32_15 = arith.constant 32 : i32
        %21 = tpu.dynamic_rotate %18 by %c32_i32_15 dim 1 : vector<1x128xf32>, i32 -> vector<1x128xf32>
        %22 = arith.addf %18, %21 : vector<1x128xf32>
        %c64_i32 = arith.constant 64 : i32
        %23 = tpu.dynamic_rotate %20 by %c64_i32 dim 1 : vector<1x128xf32>, i32 -> vector<1x128xf32>
        %24 = arith.addf %20, %23 : vector<1x128xf32>
        %c64_i32_16 = arith.constant 64 : i32
        %25 = tpu.dynamic_rotate %22 by %c64_i32_16 dim 1 : vector<1x128xf32>, i32 -> vector<1x128xf32>
        %26 = arith.addf %22, %25 : vector<1x128xf32>
        %cst = arith.constant 6.250000e-02 : f32
        %27 = vector.broadcast %cst : f32 to vector<1x128xf32>
        %28 = arith.mulf %24, %27 : vector<1x128xf32>
        %cst_17 = arith.constant 6.250000e-02 : f32
        %29 = vector.broadcast %cst_17 : f32 to vector<1x128xf32>
        %30 = arith.mulf %26, %29 : vector<1x128xf32>
        %31 = arith.mulf %28, %28 : vector<1x128xf32>
        %32 = arith.subf %30, %31 : vector<1x128xf32>
        %cst_18 = arith.constant 0.000000e+00 : f32
        %33 = vector.broadcast %cst_18 : f32 to vector<1x128xf32>
        %34 = arith.maximumf %32, %33 : vector<1x128xf32>
        %cst_19 = arith.constant 9.99999974E-6 : f32
        %35 = vector.broadcast %cst_19 : f32 to vector<1x128xf32>
        %36 = arith.addf %34, %35 : vector<1x128xf32>
        %37 = math.rsqrt %36 : vector<1x128xf32>
        %c0_20 = arith.constant 0 : index
        %c0_21 = arith.constant 0 : index
        %38 = vector.load %arg3[%c0_20, %c0_21] : memref<1x128xf32, #tpu.memory_space<vmem>>, vector<1x128xf32>
        %39 = arith.mulf %38, %37 : vector<1x128xf32>
        %c0_22 = arith.constant 0 : index
        %c0_23 = arith.constant 0 : index
        %40 = vector.load %arg8[%c0_22, %c0_23] : memref<1x128xf32, #tpu.memory_space<vmem>>, vector<1x128xf32>
        tpu.vector_store %arg8[%c0_22, %c0_23], %39 {strides = array<i32>} : memref<1x128xf32, #tpu.memory_space<vmem>>, vector<1x128xf32>,
        %c0_24 = arith.constant 0 : index
        %c0_25 = arith.constant 0 : index
        %41 = vector.load %arg4[%c0_24, %c0_25] : memref<1x128xf32, #tpu.memory_space<vmem>>, vector<1x128xf32>
        %42 = arith.mulf %28, %39 : vector<1x128xf32>
        %43 = arith.subf %41, %42 : vector<1x128xf32>
        %c0_26 = arith.constant 0 : index
        %c0_27 = arith.constant 0 : index
        %44 = vector.load %arg9[%c0_26, %c0_27] : memref<1x128xf32, #tpu.memory_space<vmem>>, vector<1x128xf32>
        tpu.vector_store %arg9[%c0_26, %c0_27], %43 {strides = array<i32>} : memref<1x128xf32, #tpu.memory_space<vmem>>, vector<1x128xf32>,
      } else {
      }
      %c0 = arith.constant 0 : index
      %c0_4 = arith.constant 0 : index
      %9 = vector.load %arg2[%c0, %c0_4] : memref<8x128xf32, #tpu.memory_space<vmem>>, vector<8x128xf32>
      %c0_5 = arith.constant 0 : index
      %c0_6 = arith.constant 0 : index
      %10 = vector.load %arg8[%c0_5, %c0_6] : memref<1x128xf32, #tpu.memory_space<vmem>>, vector<1x128xf32>
      %11 = vector.broadcast %10 : vector<1x128xf32> to vector<8x128xf32>
      %12 = arith.mulf %9, %11 : vector<8x128xf32>
      %c0_7 = arith.constant 0 : index
      %c0_8 = arith.constant 0 : index
      %13 = vector.load %arg9[%c0_7, %c0_8] : memref<1x128xf32, #tpu.memory_space<vmem>>, vector<1x128xf32>
      %14 = vector.broadcast %13 : vector<1x128xf32> to vector<8x128xf32>
      %15 = arith.addf %12, %14 : vector<8x128xf32>
      %c0_9 = arith.constant 0 : index
      %c0_10 = arith.constant 0 : index
      %16 = vector.load %arg5[%c0_9, %c0_10] : memref<8x128xf32, #tpu.memory_space<vmem>>, vector<8x128xf32>
      tpu.vector_store %arg5[%c0_9, %c0_10], %15 {strides = array<i32>} : memref<8x128xf32, #tpu.memory_space<vmem>>, vector<8x128xf32>,
    } else {
    }
    return
  }
  func.func @transform_0(%arg0: i32, %arg1: i32) -> (i32, i32) {
    %c0_i32 = arith.constant 0 : i32
    %c0_i32_0 = arith.constant 0 : i32
    return %arg1, %c0_i32 : i32, i32
  }
  func.func @transform_1(%arg0: i32, %arg1: i32) -> (i32, i32) {
    %c0_i32 = arith.constant 0 : i32
    %c0_i32_0 = arith.constant 0 : i32
    %c0_i32_1 = arith.constant 0 : i32
    return %c0_i32, %c0_i32_0 : i32, i32
  }
  func.func @transform_2(%arg0: i32, %arg1: i32) -> (i32, i32) {
    %c0_i32 = arith.constant 0 : i32
    %c0_i32_0 = arith.constant 0 : i32
    %c0_i32_1 = arith.constant 0 : i32
    return %c0_i32, %c0_i32_0 : i32, i32
  }
  func.func @transform_3(%arg0: i32, %arg1: i32) -> (i32, i32) {
    %0 = arith.muli %arg1, %arg0 : i32
    %c0_i32 = arith.constant 0 : i32
    %c0_i32_0 = arith.constant 0 : i32
    return %0, %c0_i32 : i32, i32
  }
}

</mosaic_0001>

<bundles_post_ra>
// kernel: tpu_custom_call.1
= control target key start
LH: loop header
LB: loop body
LE: loop exit
PB: predicated region body
PF: predicated region fallthrough
CT: control target
= control target key end

     0   :  { %8 = vsyncpa [#allocation7], 0  ;;  %s624_s0 = inlined_call_operand.hbm [shape: f32[4,128], index: 0, kind: input, shape index: {}]   ;;  %s625_s1 = inlined_call_operand.vmem [shape: f32[1,128], index: 1, kind: input, shape index: {}]   ;;  %s626_s2 = inlined_call_operand.vmem [shape: f32[1,128], index: 2, kind: input, shape index: {}]   ;;  %s627_s3 = inlined_call_operand.hbm [shape: f32[4,128], index: 3, kind: output, shape index: {}]  }
   0x1   :  { %9 = vsyncpa [#allocation8], 0 }
   0x2   :  { %11 = vsyncpa [#allocation8 + $0x1], 0  ;;  %s545_s12 = smov 0   ;;  %s547_s13 = smov 0  }
   0x3   :  { %s549_s14 = smov 0  }
   0x4 LB: > { %s561_s15 = sadd.s32 4294967295, %s514_s14   ;;  %s380_s16 = sadd.s32 4294967294, %s514_s14   ;;  %s514_s14 = sphi %s549_s14, %s17_s14   ;;  %s510_s13 = sphi %s547_s13, %s630_s13   ;;  %s506_s12 = sphi %s545_s12, %s629_s12  }
   0x5   : > { %s29_s17 = sadd.s32 1, %s510_s13  ;;  %p381_p0 = scmp.ge.s32.totalorder %s514_s14, 1 }
   0x6   : > { %p31_p1 = scmp.ge.s32.totalorder %s29_s17, 2  ;;  %p130_p2 = scmp.lt.s32.totalorder %s514_s14, 3 }
   0x8   : > { %s632_s17 = smov (%p31_p1, %s29_s17), 0  ;;  %p569_p3 = pnand %p381_p0, %p130_p2 }
   0x9   : > { %p382_p4 = scmp.ne.s32.totalorder (!%p569_p3), %s561_s15, 0 }
   0xa   : > { %134 = sbr.rel (%p569_p3) target bundleno = 42 (0x2a), region = 12 }
  0x11   : > { %138 = sbr.rel (%p382_p4) target bundleno = 42 (0x2a), region = 16 }
  0x18   : > { %144 = vsyncadd [#allocation7], 64  ;;  %s516_s19 = smov [#allocation6]   ;;  %s440_s23 = scalar_lea.hbm %s624_s0, 64 }
  0x19   : > { %s149_s20 = sshll.u32 %s516_s19, 4  ;;  %p441_p5 = scmp.ne.s32.totalorder %s624_s0, %s440_s23  ;;  %s150_s20 = int_to_ptr.vmem [resolvable:$true] %s149_s20 }
  0x1a   : > { %p444_p6 = scmp.lt.u32.totalorder %s440_s23, %s624_s0 }
  0x1c   : > { %p446_p7 = pnand %p444_p6, %p441_p5 }
  0x1e   : > { %449 = shalt.err (!%p446_p7)
}
  0x1f   : > { %s450_s28 = scalar_lea.vmem %s150_s20, 64  ;;  %s454_s29 = scalar_lea.vmem %s150_s20, 128 }
  0x20   : > { %p451_p8 = scmp.ne.s32.totalorder %s150_s20, %s450_s28  ;;  %p455_p9 = scmp.lt.s32.totalorder %s150_s20, %s150_s20 }
  0x21   : > { %p456_p10 = scmp.lt.s32.totalorder %s454_s29, %s450_s28 }
  0x23   : > { %p457_p11 = por %p456_p10, %p455_p9 }
  0x25   : > { %p458_p12 = pnand %p457_p11, %p451_p8 }
  0x27   : > { %461 = shalt.err (!%p458_p12)
}
  0x28   : > { %s517_s30 = smov 64   ;;  %s518_s4 = smov 4  }
  0x29   : > { %155 = dma.hbm_to_vmem [thread:$0]  %s624_s0, 64, %s150_s20, [#allocation7], %s517_s30, %s517_s30, %s518_s4  }
  0x2a PF: > { %171 = sbr.rel (%p569_p3) target bundleno = 376 (0x178), region = 32  ;;  %p402_p13 = scmp.eq.s32.totalorder (!%p569_p3), %s561_s15, 0 }
  0x31   : > { %497 = dma.done.wait (%p402_p13), [#allocation7], 128  }
  0x32   : > { %499 = vsyncadd (%p402_p13), [#allocation7], 4294967168  ;;  %p385_p0 = scmp.ne.s32.totalorder %s506_s12, 0 }
  0x33   : > { %v386_v0 = vld [vmem:[#allocation6] sm:$0xf] (!%p385_p0)  ;;  %v519_v1 = vmov (!%p385_p0), 0.0  }
  0x34   : > { %200 = sbr.rel (%p385_p0) target bundleno = 69 (0x45), region = 40  ;;  %205 = vst [vmem:[#allocation2] sm:$0x1] (!%p385_p0), %v519_v1  ;;  %206 = vst [vmem:[#allocation3] sm:$0x1] (!%p385_p0), %v519_v1  ;;  %v216_v2 = vrot.slane (!%p385_p0), %v386_v0, 4  ;;  %v225_v3 = vmul.f32 (!%p385_p0), %v386_v0, %v386_v0 }
  0x36   : > { %v217_v4 = vadd.f32 (!%p385_p0), %v386_v0, %v216_v2  ;;  %v226_v5 = vrot.slane (!%p385_p0), %v225_v3, 4 }
  0x38   : > { %v218_v6 = vrot.slane (!%p385_p0), %v217_v4, 2  ;;  %v227_v7 = vadd.f32 (!%p385_p0), %v226_v5, %v225_v3 }
  0x3a   : > { %v219_v8 = vadd.f32 (!%p385_p0), %v218_v6, %v217_v4  ;;  %v228_v9 = vrot.slane (!%p385_p0), %v227_v7, 2 }
  0x3b   : > { %v215_v12 = vld [vmem:[#allocation2] sm:$0x1]  ;;  %v224_v15 = vld [vmem:[#allocation3] sm:$0x1] }
  0x3c   : > { %v220_v10 = vrot.slane %v219_v8, 1  ;;  %v229_v11 = vadd.f32 %v228_v9, %v227_v7 }
  0x3e   : > { %v221_v13 = vadd.f32 %v220_v10, %v219_v8  ;;  %v230_v14 = vrot.slane %v229_v11, 1 }
  0x40   : > { %v222_v16 = vadd.f32 %v221_v13, %v215_v12  ;;  %v231_v17 = vadd.f32 %v230_v14, %v229_v11 }
  0x42   : > { %223 = vst [vmem:[#allocation2] sm:$0x1] %v222_v16  ;;  %v232_v18 = vadd.f32 %v231_v17, %v224_v15 }
  0x44   : > { %233 = vst [vmem:[#allocation3] sm:$0x1] %v232_v18 }
  0x45 PF: > { %p387_p1 = scmp.ne.s32.totalorder %s506_s12, 1 }
  0x46   : > { %s520_s7 = smov (!%p387_p1), 32   ;;  %s521_s8 = smov (!%p387_p1), 64   ;;  %v263_v35 = vld [vmem:[%s625_s1] sm:$0x1] (!%p387_p1)  ;;  %v270_v41 = vld [vmem:[#allocation6] sm:$0xff] (!%p387_p1) }
  0x47   : > { %237 = sbr.rel (%p387_p1) target bundleno = 348 (0x15c), region = 48  ;;  %v266_v38 = vld [vmem:[%s626_s2] sm:$0x1] (!%p387_p1) }
  0x49   : > { %v242_v19 = vld [vmem:[#allocation2] sm:$0x1] (!%p387_p1) }
  0x4a   : > { %244 = vrot.lane.b32.xlu0 (!%p387_p1), %v242_v19, %s520_s7 }
  0x4b   : > { %v243_v20 = vld [vmem:[#allocation3] sm:$0x1] (!%p387_p1) }
  0x4e   : > { %247 = vrot.lane.b32.xlu0 %v243_v20, %s520_s7 }
  0xbc   : > { %v245_v21 = vpop.permute.xlu0 %244 }
  0xbd   : > { %v246_v22 = vadd.f32 %v245_v21, %v242_v19 }
  0xbf   : > { %250 = vrot.lane.b32.xlu1 %v246_v22, %s521_s8 }
  0xc0   : > { %v248_v23 = vpop.permute.xlu0 %247 }
  0xc1   : > { %v249_v24 = vadd.f32 %v248_v23, %v243_v20 }
  0xc3   : > { %253 = vrot.lane.b32.xlu1 %v249_v24, %s521_s8 }
 0x131   : > { %v251_v25 = vpop.permute.xlu1 %250 }
 0x132   : > { %v252_v26 = vadd.f32 %v251_v25, %v246_v22 }
 0x134   : > { %v256_v27 = vmul.f32 0.0625, %v252_v26 }
 0x135   : > { %v254_v28 = vpop.permute.xlu1 %253 }
 0x136   : > { %v255_v29 = vadd.f32 %v254_v28, %v249_v24  ;;  %v258_v30 = vmul.f32 %v256_v27, %v256_v27 }
 0x138   : > { %v257_v31 = vmul.f32 0.0625, %v255_v29 }
 0x13a   : > { %v259_v32 = vsub.f32 %v257_v31, %v258_v30 }
 0x13c   : > { %v260_v33 = vmax.f32 %v259_v32, 0.0 }
 0x13e   : > { %v261_v34 = vadd.f32 1e-05, %v260_v33 }
 0x140   : > { %438 = vrsqrt.f32 %v261_v34 }
 0x14a   : > { %v439_v36 = vpop.eup %438 }
 0x14b   : > { %v264_v37 = vmul.f32 %v439_v36, %v263_v35 }
 0x14d   : > { %265 = vst [vmem:[#allocation4] sm:$0x1] %v264_v37  ;;  %v267_v39 = vmul.f32 %v264_v37, %v256_v27 }
 0x14f   : > { %v268_v40 = vsub.f32 %v266_v38, %v267_v39 }
 0x151   : > { %269 = vst [vmem:[#allocation5] sm:$0x1] %v268_v40 }
 0x154   : > { %v388_v42 = vld [vmem:[#allocation4] ss:$0 sm:$0xff] }
 0x155   : > { %v278_v43 = vmul.f32 %v388_v42, %v270_v41 }
 0x158   : > { %v389_v44 = vld [vmem:[#allocation5] ss:$0 sm:$0xff] }
 0x159   : > { %v286_v45 = vadd.f32 %v389_v44, %v278_v43 }
 0x15b   : > { %287 = vst [vmem:[#allocation9] sm:$0xff] %v286_v45 }
 0x15c PF: > { %p390_p2 = scmp.ne.s32.totalorder %s561_s15, 1 }
 0x15e   : > { %295 = sbr.rel (%p390_p2) target bundleno = 376 (0x178), region = 56 }
 0x165   : > { %302 = vsyncadd [#allocation8], 64  ;;  %s522_s18 = smov [#allocation9]  }
 0x166   : > { %s307_s19 = sshll.u32 %s522_s18, 4  ;;  %s308_s19 = int_to_ptr.vmem [resolvable:$true] %s307_s19 }
 0x167   : > { %s462_s20 = scalar_lea.vmem %s308_s19, 64  ;;  %s466_s21 = scalar_lea.vmem %s308_s19, 256 }
 0x168   : > { %p463_p3 = scmp.ne.s32.totalorder %s308_s19, %s462_s20  ;;  %p467_p4 = scmp.lt.s32.totalorder %s308_s19, %s308_s19 }
 0x169   : > { %p468_p5 = scmp.lt.s32.totalorder %s466_s21, %s462_s20 }
 0x16b   : > { %p469_p6 = por %p468_p5, %p467_p4 }
 0x16d   : > { %p470_p7 = pnand %p469_p6, %p463_p3 }
 0x16f   : > { %473 = shalt.err (!%p470_p7)
}
 0x170   : > { %s474_s24 = scalar_lea.hbm %s627_s3, 64 }
 0x171   : > { %p475_p8 = scmp.ne.s32.totalorder %s627_s3, %s474_s24  ;;  %p478_p9 = scmp.lt.u32.totalorder %s474_s24, %s627_s3 }
 0x173   : > { %p480_p10 = pnand %p478_p9, %p475_p8 }
 0x175   : > { %483 = shalt.err (!%p480_p10)
}
 0x176   : > { %s523_s28 = smov 64   ;;  %s524_s29 = smov 4  }
 0x177   : > { %313 = dma.vmem_to_hbm [thread:$0]  %s308_s19, 64, %s627_s3, [#allocation8], %s523_s28, %s523_s28, %s524_s29  }
 0x178 PF: > { %p403_p11 = scmp.ge.s32.totalorder %s514_s14, 2  ;;  %p404_p12 = scmp.eq.s32.totalorder %s380_s16, 1 }
 0x17a   : > { %p399_p13 = pnand %p404_p12, %p403_p11 }
 0x17c   : > { %501 = dma.done.wait (!%p399_p13), [#allocation8], 128  }
 0x17d   : > { %503 = vsyncadd (!%p399_p13), [#allocation8], 4294967168  ;;  %s17_s14 = sadd.s32 1, %s514_s14   ;;  %s629_s12 = smov %s510_s13 }
 0x17e   : > { %p14_p0 = scmp.ge.s32.totalorder %s17_s14, 4   ;;  %s630_s13 = smov %s632_s17 }
 0x180   :  { %16 = sbr.rel (!%p14_p0) target bundleno = 4 (0x4), region = 86 }
 0x187   :  { %328 = vsyncpa [#allocation7], 1 }
 0x188   :  { %330 = vsyncpa [#allocation7 + $0x1], 1 }
 0x189   :  { %331 = vsyncpa [#allocation8], 1 }
 0x18a   :  { %333 = vsyncpa [#allocation8 + $0x1], 1 }

</bundles_post_ra>
